<compile_context>
chip_gen: v6e
topology: v6e:2x2x1
jax: 0.10.0
libtpu: 0.0.40
codegen_flags: <defaults>
</compile_context>

<pallas_src>
import jax
import jax.numpy as jnp
from jax.experimental import pallas as pl
from jax.experimental.pallas import tpu as pltpu

# ---- module hyper-parameters (consistent with __init__, small demo sizes) ----
N_CTX = 16                      # n_ctx
N_PROMPT = 4                    # self.N (number of prompt ensembles)
N_CLS = 3                       # number of classnames
CTX_DIM = 128                   # token-embedding width; MUST be a multiple of 128
                                # (real CLIP: 512 or 768, both multiples of 128)
SEQ_LEN = 77                    # CLIP max_length
SUF_LEN = SEQ_LEN - 1 - N_CTX   # 60
N_TOTAL = N_PROMPT * N_CLS      # 12 prompts


def _ctx_scatter_kernel(ctx_ref, tmpl_ref, out_ref, sem):
    """Scatter the learned ctx rows into the aliased prefix+suffix template.

    ctx_ref  : (N_PROMPT, N_CTX, D)   VMEM  learned context (one block per ensemble)
    tmpl_ref : (N_TOTAL, SEQ_LEN, D)  HBM   frozen template (same buffer as out_ref)
    out_ref  : (N_TOTAL, SEQ_LEN, D)  HBM   output prompts (aliased + donated)
    sem      : (N_PROMPT, N_CLS)      DMA completion semaphores
    """
    del tmpl_ref  # Same buffer as out_ref: prefix/suffix rows are already resident.

    # prompt row b = n*N_CLS + c uses ensemble n  (== permute(1,0,2,3).reshape in PyTorch).
    # Issue every DMA first (all in flight / overlapping), then wait.  Each transfer is a
    # contiguous (N_CTX, D) slab, lane-dense since D % 128 == 0.
    copies = []
    for n in range(N_PROMPT):          # tiny static unroll (4 x 3 = 12 DMAs at demo size)
        for c in range(N_CLS):
            row = n * N_CLS + c
            cp = pltpu.make_async_copy(
                ctx_ref.at[n],                              # (N_CTX, D) in VMEM
                out_ref.at[row, pl.ds(1, N_CTX), :],        # ctx hole of prompt `row`
                sem.at[n, c],
            )
            cp.start()
            copies.append(cp)
    for cp in copies:
        cp.wait()


def build_prompt_template(token_prefix, token_suffix):
    """Init-time (frozen-buffer) work: (N_TOTAL, SEQ_LEN, D) template.

    Row layout along seq: [prefix (1 tok)] [ctx hole (n_ctx toks)] [suffix (60 toks)].
    Mirrors registering token_prefix / token_suffix as buffers in __init__; computed once.
    """
    n_total, _, d = token_prefix.shape
    hole = jnp.zeros((n_total, N_CTX, d), token_prefix.dtype)
    return jnp.concatenate([token_prefix, hole, token_suffix], axis=1)


def _forward_impl(ctx, template):
    """ctx: (N_PROMPT, N_CTX, D) parameter; template: (N_TOTAL, SEQ_LEN, D) (donated)."""
    n_prompt, n_ctx, d = ctx.shape
    n_total, seq_len, d2 = template.shape
    assert (n_prompt, n_ctx) == (N_PROMPT, N_CTX)
    assert (n_total, seq_len, d2) == (N_TOTAL, SEQ_LEN, d)
    assert d % 128 == 0, "ctx_dim must be a multiple of 128 lanes (CLIP: 512/768)"
    assert ctx.dtype == template.dtype

    return pl.pallas_call(
        _ctx_scatter_kernel,
        out_shape=jax.ShapeDtypeStruct(template.shape, template.dtype),
        in_specs=[
            # ctx: whole (4,16,128) = 32 KB array, auto-copied to VMEM (no tiling needed).
            pl.BlockSpec(memory_space=pltpu.MemorySpace.VMEM),
            # template: stays in HBM; it IS the output buffer (aliased below).
            pl.BlockSpec(memory_space=pl.ANY),
        ],
        out_specs=pl.BlockSpec(memory_space=pl.ANY),   # written via manual DMA only
        scratch_shapes=[pltpu.SemaphoreType.DMA((N_PROMPT, N_CLS))],
        input_output_aliases={1: 0},                   # template buffer IS the output
    )(ctx, template)


# jit + donate the template so the pallas-level alias is a true donation (no defensive
# full-template copy by XLA).  The returned prompts buffer is a valid template for the
# next call because the kernel overwrites the ENTIRE ctx hole every call.
prompt_learner_forward = jax.jit(_forward_impl, donate_argnums=(1,))


def prompt_learner_reference(ctx, token_prefix, token_suffix):
    """Pure-JAX reference mirroring the PyTorch forward (class_token_position='end')."""
    n_prompt, n_ctx, d = ctx.shape
    n_cls = token_prefix.shape[0] // n_prompt
    c = jnp.broadcast_to(ctx[None], (n_cls, n_prompt, n_ctx, d))
    c = jnp.transpose(c, (1, 0, 2, 3)).reshape(n_prompt * n_cls, n_ctx, d)
    return jnp.concatenate([token_prefix, c, token_suffix], axis=1)


if __name__ == "__main__":
    key = jax.random.PRNGKey(0)
    k_ctx, k_pre, k_suf = jax.random.split(key, 3)

    # Deterministic synthetic parameters/buffers (shapes from __init__):
    #   ctx ~ Normal(0, 0.02) of shape (N, n_ctx, ctx_dim)
    #   token_prefix / token_suffix stand in for the frozen CLIP text embeddings.
    ctx = (0.02 * jax.random.normal(k_ctx, (N_PROMPT, N_CTX, CTX_DIM))).astype(jnp.float32)
    token_prefix = jax.random.normal(k_pre, (N_TOTAL, 1, CTX_DIM), jnp.float32)
    token_suffix = jax.random.normal(k_suf, (N_TOTAL, SUF_LEN, CTX_DIM), jnp.float32)

    # Init-time: bake the frozen prefix/suffix into the prompt template (ctx rows = hole).
    template = build_prompt_template(token_prefix, token_suffix)

    # Forward #1: template buffer is donated and scattered into in place.
    prompts = prompt_learner_forward(ctx, template)
    prompts = jax.block_until_ready(prompts)

    ref = prompt_learner_reference(ctx, token_prefix, token_suffix)
    assert prompts.shape == (N_TOTAL, SEQ_LEN, CTX_DIM), prompts.shape
    assert jnp.allclose(prompts, ref), "mismatch vs reference (call 1)"

    # Forward #2: ping-pong — reuse the previous output as the next template (valid
    # because the kernel fully overwrites the ctx hole).  `prompts` is donated here and
    # must not be used afterwards.
    ctx2 = ctx + 1.0
    prompts2 = prompt_learner_forward(ctx2, prompts)
    prompts2 = jax.block_until_ready(prompts2)

    ref2 = prompt_learner_reference(ctx2, token_prefix, token_suffix)
    assert prompts2.shape == (N_TOTAL, SEQ_LEN, CTX_DIM), prompts2.shape
    assert jnp.allclose(prompts2, ref2), "mismatch vs reference (call 2, ping-pong)"

    print("KERNEL_OK")
</pallas_src>

<mosaic_0001>
module attributes {stable_mosaic.version = 11 : i64} {
  func.func @_ctx_scatter_kernel(%arg0: memref<4x16x128xf32, #tpu.memory_space<vmem>>, %arg1: memref<12x77x128xf32, #tpu.memory_space<any>>, %arg2: memref<12x77x128xf32, #tpu.memory_space<any>>, %arg3: memref<4x3x!tpu.dma_semaphore, #tpu.memory_space<semaphore_mem>>) attributes {dimension_semantics = [], scalar_prefetch = 0 : i64, scratch_operands = 1 : i64, tpu.core_type = #tpu.core_type<tc>} {
    %c0_i32 = arith.constant 0 : i32
    %c0_i32_0 = arith.constant 0 : i32
    %c0_i32_1 = arith.constant 0 : i32
    %c0_i32_2 = arith.constant 0 : i32
    %c0_i32_3 = arith.constant 0 : i32
    %c0_i32_4 = arith.constant 0 : i32
    %0 = tpu.memref_slice %arg0[%c0_i32, %c0_i32_3, %c0_i32_4] : memref<4x16x128xf32, #tpu.memory_space<vmem>> -> memref<1x16x128xf32, #tpu.memory_space<vmem>>
    %1 = tpu.memref_squeeze %0 : memref<1x16x128xf32, #tpu.memory_space<vmem>> -> memref<16x128xf32, #tpu.memory_space<vmem>>
    %c1_i32 = arith.constant 1 : i32
    %c0_i32_5 = arith.constant 0 : i32
    %2 = tpu.memref_slice %arg2[%c0_i32_0, %c1_i32, %c0_i32_5] : memref<12x77x128xf32, #tpu.memory_space<any>> -> memref<1x16x128xf32, #tpu.memory_space<any>>
    %3 = tpu.memref_squeeze %2 : memref<1x16x128xf32, #tpu.memory_space<any>> -> memref<16x128xf32, #tpu.memory_space<any>>
    %4 = tpu.memref_slice %arg3[%c0_i32_1, %c0_i32_2] : memref<4x3x!tpu.dma_semaphore, #tpu.memory_space<semaphore_mem>> -> memref<1x1x!tpu.dma_semaphore, #tpu.memory_space<semaphore_mem>>
    %5 = tpu.memref_squeeze %4 : memref<1x1x!tpu.dma_semaphore, #tpu.memory_space<semaphore_mem>> -> memref<!tpu.dma_semaphore, #tpu.memory_space<semaphore_mem>>
    tpu.enqueue_dma source(%1 : memref<16x128xf32, #tpu.memory_space<vmem>>) target(%3 : memref<16x128xf32, #tpu.memory_space<any>>) target_semaphore(%5 : memref<!tpu.dma_semaphore, #tpu.memory_space<semaphore_mem>>)
    %c0_i32_6 = arith.constant 0 : i32
    %c1_i32_7 = arith.constant 1 : i32
    %c0_i32_8 = arith.constant 0 : i32
    %c1_i32_9 = arith.constant 1 : i32
    %c0_i32_10 = arith.constant 0 : i32
    %c0_i32_11 = arith.constant 0 : i32
    %6 = tpu.memref_slice %arg0[%c0_i32_6, %c0_i32_10, %c0_i32_11] : memref<4x16x128xf32, #tpu.memory_space<vmem>> -> memref<1x16x128xf32, #tpu.memory_space<vmem>>
    %7 = tpu.memref_squeeze %6 : memref<1x16x128xf32, #tpu.memory_space<vmem>> -> memref<16x128xf32, #tpu.memory_space<vmem>>
    %c1_i32_12 = arith.constant 1 : i32
    %c0_i32_13 = arith.constant 0 : i32
    %8 = tpu.memref_slice %arg2[%c1_i32_7, %c1_i32_12, %c0_i32_13] : memref<12x77x128xf32, #tpu.memory_space<any>> -> memref<1x16x128xf32, #tpu.memory_space<any>>
    %9 = tpu.memref_squeeze %8 : memref<1x16x128xf32, #tpu.memory_space<any>> -> memref<16x128xf32, #tpu.memory_space<any>>
    %10 = tpu.memref_slice %arg3[%c0_i32_8, %c1_i32_9] : memref<4x3x!tpu.dma_semaphore, #tpu.memory_space<semaphore_mem>> -> memref<1x1x!tpu.dma_semaphore, #tpu.memory_space<semaphore_mem>>
    %11 = tpu.memref_squeeze %10 : memref<1x1x!tpu.dma_semaphore, #tpu.memory_space<semaphore_mem>> -> memref<!tpu.dma_semaphore, #tpu.memory_space<semaphore_mem>>
    tpu.enqueue_dma source(%7 : memref<16x128xf32, #tpu.memory_space<vmem>>) target(%9 : memref<16x128xf32, #tpu.memory_space<any>>) target_semaphore(%11 : memref<!tpu.dma_semaphore, #tpu.memory_space<semaphore_mem>>)
    %c0_i32_14 = arith.constant 0 : i32
    %c2_i32 = arith.constant 2 : i32
    %c0_i32_15 = arith.constant 0 : i32
    %c2_i32_16 = arith.constant 2 : i32
    %c0_i32_17 = arith.constant 0 : i32
    %c0_i32_18 = arith.constant 0 : i32
    %12 = tpu.memref_slice %arg0[%c0_i32_14, %c0_i32_17, %c0_i32_18] : memref<4x16x128xf32, #tpu.memory_space<vmem>> -> memref<1x16x128xf32, #tpu.memory_space<vmem>>
    %13 = tpu.memref_squeeze %12 : memref<1x16x128xf32, #tpu.memory_space<vmem>> -> memref<16x128xf32, #tpu.memory_space<vmem>>
    %c1_i32_19 = arith.constant 1 : i32
    %c0_i32_20 = arith.constant 0 : i32
    %14 = tpu.memref_slice %arg2[%c2_i32, %c1_i32_19, %c0_i32_20] : memref<12x77x128xf32, #tpu.memory_space<any>> -> memref<1x16x128xf32, #tpu.memory_space<any>>
    %15 = tpu.memref_squeeze %14 : memref<1x16x128xf32, #tpu.memory_space<any>> -> memref<16x128xf32, #tpu.memory_space<any>>
    %16 = tpu.memref_slice %arg3[%c0_i32_15, %c2_i32_16] : memref<4x3x!tpu.dma_semaphore, #tpu.memory_space<semaphore_mem>> -> memref<1x1x!tpu.dma_semaphore, #tpu.memory_space<semaphore_mem>>
    %17 = tpu.memref_squeeze %16 : memref<1x1x!tpu.dma_semaphore, #tpu.memory_space<semaphore_mem>> -> memref<!tpu.dma_semaphore, #tpu.memory_space<semaphore_mem>>
    tpu.enqueue_dma source(%13 : memref<16x128xf32, #tpu.memory_space<vmem>>) target(%15 : memref<16x128xf32, #tpu.memory_space<any>>) target_semaphore(%17 : memref<!tpu.dma_semaphore, #tpu.memory_space<semaphore_mem>>)
    %c1_i32_21 = arith.constant 1 : i32
    %c3_i32 = arith.constant 3 : i32
    %c1_i32_22 = arith.constant 1 : i32
    %c0_i32_23 = arith.constant 0 : i32
    %c0_i32_24 = arith.constant 0 : i32
    %c0_i32_25 = arith.constant 0 : i32
    %18 = tpu.memref_slice %arg0[%c1_i32_21, %c0_i32_24, %c0_i32_25] : memref<4x16x128xf32, #tpu.memory_space<vmem>> -> memref<1x16x128xf32, #tpu.memory_space<vmem>>
    %19 = tpu.memref_squeeze %18 : memref<1x16x128xf32, #tpu.memory_space<vmem>> -> memref<16x128xf32, #tpu.memory_space<vmem>>
    %c1_i32_26 = arith.constant 1 : i32
    %c0_i32_27 = arith.constant 0 : i32
    %20 = tpu.memref_slice %arg2[%c3_i32, %c1_i32_26, %c0_i32_27] : memref<12x77x128xf32, #tpu.memory_space<any>> -> memref<1x16x128xf32, #tpu.memory_space<any>>
    %21 = tpu.memref_squeeze %20 : memref<1x16x128xf32, #tpu.memory_space<any>> -> memref<16x128xf32, #tpu.memory_space<any>>
    %22 = tpu.memref_slice %arg3[%c1_i32_22, %c0_i32_23] : memref<4x3x!tpu.dma_semaphore, #tpu.memory_space<semaphore_mem>> -> memref<1x1x!tpu.dma_semaphore, #tpu.memory_space<semaphore_mem>>
    %23 = tpu.memref_squeeze %22 : memref<1x1x!tpu.dma_semaphore, #tpu.memory_space<semaphore_mem>> -> memref<!tpu.dma_semaphore, #tpu.memory_space<semaphore_mem>>
    tpu.enqueue_dma source(%19 : memref<16x128xf32, #tpu.memory_space<vmem>>) target(%21 : memref<16x128xf32, #tpu.memory_space<any>>) target_semaphore(%23 : memref<!tpu.dma_semaphore, #tpu.memory_space<semaphore_mem>>)
    %c1_i32_28 = arith.constant 1 : i32
    %c4_i32 = arith.constant 4 : i32
    %c1_i32_29 = arith.constant 1 : i32
    %c1_i32_30 = arith.constant 1 : i32
    %c0_i32_31 = arith.constant 0 : i32
    %c0_i32_32 = arith.constant 0 : i32
    %24 = tpu.memref_slice %arg0[%c1_i32_28, %c0_i32_31, %c0_i32_32] : memref<4x16x128xf32, #tpu.memory_space<vmem>> -> memref<1x16x128xf32, #tpu.memory_space<vmem>>
    %25 = tpu.memref_squeeze %24 : memref<1x16x128xf32, #tpu.memory_space<vmem>> -> memref<16x128xf32, #tpu.memory_space<vmem>>
    %c1_i32_33 = arith.constant 1 : i32
    %c0_i32_34 = arith.constant 0 : i32
    %26 = tpu.memref_slice %arg2[%c4_i32, %c1_i32_33, %c0_i32_34] : memref<12x77x128xf32, #tpu.memory_space<any>> -> memref<1x16x128xf32, #tpu.memory_space<any>>
    %27 = tpu.memref_squeeze %26 : memref<1x16x128xf32, #tpu.memory_space<any>> -> memref<16x128xf32, #tpu.memory_space<any>>
    %28 = tpu.memref_slice %arg3[%c1_i32_29, %c1_i32_30] : memref<4x3x!tpu.dma_semaphore, #tpu.memory_space<semaphore_mem>> -> memref<1x1x!tpu.dma_semaphore, #tpu.memory_space<semaphore_mem>>
    %29 = tpu.memref_squeeze %28 : memref<1x1x!tpu.dma_semaphore, #tpu.memory_space<semaphore_mem>> -> memref<!tpu.dma_semaphore, #tpu.memory_space<semaphore_mem>>
    tpu.enqueue_dma source(%25 : memref<16x128xf32, #tpu.memory_space<vmem>>) target(%27 : memref<16x128xf32, #tpu.memory_space<any>>) target_semaphore(%29 : memref<!tpu.dma_semaphore, #tpu.memory_space<semaphore_mem>>)
    %c1_i32_35 = arith.constant 1 : i32
    %c5_i32 = arith.constant 5 : i32
    %c1_i32_36 = arith.constant 1 : i32
    %c2_i32_37 = arith.constant 2 : i32
    %c0_i32_38 = arith.constant 0 : i32
    %c0_i32_39 = arith.constant 0 : i32
    %30 = tpu.memref_slice %arg0[%c1_i32_35, %c0_i32_38, %c0_i32_39] : memref<4x16x128xf32, #tpu.memory_space<vmem>> -> memref<1x16x128xf32, #tpu.memory_space<vmem>>
    %31 = tpu.memref_squeeze %30 : memref<1x16x128xf32, #tpu.memory_space<vmem>> -> memref<16x128xf32, #tpu.memory_space<vmem>>
    %c1_i32_40 = arith.constant 1 : i32
    %c0_i32_41 = arith.constant 0 : i32
    %32 = tpu.memref_slice %arg2[%c5_i32, %c1_i32_40, %c0_i32_41] : memref<12x77x128xf32, #tpu.memory_space<any>> -> memref<1x16x128xf32, #tpu.memory_space<any>>
    %33 = tpu.memref_squeeze %32 : memref<1x16x128xf32, #tpu.memory_space<any>> -> memref<16x128xf32, #tpu.memory_space<any>>
    %34 = tpu.memref_slice %arg3[%c1_i32_36, %c2_i32_37] : memref<4x3x!tpu.dma_semaphore, #tpu.memory_space<semaphore_mem>> -> memref<1x1x!tpu.dma_semaphore, #tpu.memory_space<semaphore_mem>>
    %35 = tpu.memref_squeeze %34 : memref<1x1x!tpu.dma_semaphore, #tpu.memory_space<semaphore_mem>> -> memref<!tpu.dma_semaphore, #tpu.memory_space<semaphore_mem>>
    tpu.enqueue_dma source(%31 : memref<16x128xf32, #tpu.memory_space<vmem>>) target(%33 : memref<16x128xf32, #tpu.memory_space<any>>) target_semaphore(%35 : memref<!tpu.dma_semaphore, #tpu.memory_space<semaphore_mem>>)
    %c2_i32_42 = arith.constant 2 : i32
    %c6_i32 = arith.constant 6 : i32
    %c2_i32_43 = arith.constant 2 : i32
    %c0_i32_44 = arith.constant 0 : i32
    %c0_i32_45 = arith.constant 0 : i32
    %c0_i32_46 = arith.constant 0 : i32
    %36 = tpu.memref_slice %arg0[%c2_i32_42, %c0_i32_45, %c0_i32_46] : memref<4x16x128xf32, #tpu.memory_space<vmem>> -> memref<1x16x128xf32, #tpu.memory_space<vmem>>
    %37 = tpu.memref_squeeze %36 : memref<1x16x128xf32, #tpu.memory_space<vmem>> -> memref<16x128xf32, #tpu.memory_space<vmem>>
    %c1_i32_47 = arith.constant 1 : i32
    %c0_i32_48 = arith.constant 0 : i32
    %38 = tpu.memref_slice %arg2[%c6_i32, %c1_i32_47, %c0_i32_48] : memref<12x77x128xf32, #tpu.memory_space<any>> -> memref<1x16x128xf32, #tpu.memory_space<any>>
    %39 = tpu.memref_squeeze %38 : memref<1x16x128xf32, #tpu.memory_space<any>> -> memref<16x128xf32, #tpu.memory_space<any>>
    %40 = tpu.memref_slice %arg3[%c2_i32_43, %c0_i32_44] : memref<4x3x!tpu.dma_semaphore, #tpu.memory_space<semaphore_mem>> -> memref<1x1x!tpu.dma_semaphore, #tpu.memory_space<semaphore_mem>>
    %41 = tpu.memref_squeeze %40 : memref<1x1x!tpu.dma_semaphore, #tpu.memory_space<semaphore_mem>> -> memref<!tpu.dma_semaphore, #tpu.memory_space<semaphore_mem>>
    tpu.enqueue_dma source(%37 : memref<16x128xf32, #tpu.memory_space<vmem>>) target(%39 : memref<16x128xf32, #tpu.memory_space<any>>) target_semaphore(%41 : memref<!tpu.dma_semaphore, #tpu.memory_space<semaphore_mem>>)
    %c2_i32_49 = arith.constant 2 : i32
    %c7_i32 = arith.constant 7 : i32
    %c2_i32_50 = arith.constant 2 : i32
    %c1_i32_51 = arith.constant 1 : i32
    %c0_i32_52 = arith.constant 0 : i32
    %c0_i32_53 = arith.constant 0 : i32
    %42 = tpu.memref_slice %arg0[%c2_i32_49, %c0_i32_52, %c0_i32_53] : memref<4x16x128xf32, #tpu.memory_space<vmem>> -> memref<1x16x128xf32, #tpu.memory_space<vmem>>
    %43 = tpu.memref_squeeze %42 : memref<1x16x128xf32, #tpu.memory_space<vmem>> -> memref<16x128xf32, #tpu.memory_space<vmem>>
    %c1_i32_54 = arith.constant 1 : i32
    %c0_i32_55 = arith.constant 0 : i32
    %44 = tpu.memref_slice %arg2[%c7_i32, %c1_i32_54, %c0_i32_55] : memref<12x77x128xf32, #tpu.memory_space<any>> -> memref<1x16x128xf32, #tpu.memory_space<any>>
    %45 = tpu.memref_squeeze %44 : memref<1x16x128xf32, #tpu.memory_space<any>> -> memref<16x128xf32, #tpu.memory_space<any>>
    %46 = tpu.memref_slice %arg3[%c2_i32_50, %c1_i32_51] : memref<4x3x!tpu.dma_semaphore, #tpu.memory_space<semaphore_mem>> -> memref<1x1x!tpu.dma_semaphore, #tpu.memory_space<semaphore_mem>>
    %47 = tpu.memref_squeeze %46 : memref<1x1x!tpu.dma_semaphore, #tpu.memory_space<semaphore_mem>> -> memref<!tpu.dma_semaphore, #tpu.memory_space<semaphore_mem>>
    tpu.enqueue_dma source(%43 : memref<16x128xf32, #tpu.memory_space<vmem>>) target(%45 : memref<16x128xf32, #tpu.memory_space<any>>) target_semaphore(%47 : memref<!tpu.dma_semaphore, #tpu.memory_space<semaphore_mem>>)
    %c2_i32_56 = arith.constant 2 : i32
    %c8_i32 = arith.constant 8 : i32
    %c2_i32_57 = arith.constant 2 : i32
    %c2_i32_58 = arith.constant 2 : i32
    %c0_i32_59 = arith.constant 0 : i32
    %c0_i32_60 = arith.constant 0 : i32
    %48 = tpu.memref_slice %arg0[%c2_i32_56, %c0_i32_59, %c0_i32_60] : memref<4x16x128xf32, #tpu.memory_space<vmem>> -> memref<1x16x128xf32, #tpu.memory_space<vmem>>
    %49 = tpu.memref_squeeze %48 : memref<1x16x128xf32, #tpu.memory_space<vmem>> -> memref<16x128xf32, #tpu.memory_space<vmem>>
    %c1_i32_61 = arith.constant 1 : i32
    %c0_i32_62 = arith.constant 0 : i32
    %50 = tpu.memref_slice %arg2[%c8_i32, %c1_i32_61, %c0_i32_62] : memref<12x77x128xf32, #tpu.memory_space<any>> -> memref<1x16x128xf32, #tpu.memory_space<any>>
    %51 = tpu.memref_squeeze %50 : memref<1x16x128xf32, #tpu.memory_space<any>> -> memref<16x128xf32, #tpu.memory_space<any>>
    %52 = tpu.memref_slice %arg3[%c2_i32_57, %c2_i32_58] : memref<4x3x!tpu.dma_semaphore, #tpu.memory_space<semaphore_mem>> -> memref<1x1x!tpu.dma_semaphore, #tpu.memory_space<semaphore_mem>>
    %53 = tpu.memref_squeeze %52 : memref<1x1x!tpu.dma_semaphore, #tpu.memory_space<semaphore_mem>> -> memref<!tpu.dma_semaphore, #tpu.memory_space<semaphore_mem>>
    tpu.enqueue_dma source(%49 : memref<16x128xf32, #tpu.memory_space<vmem>>) target(%51 : memref<16x128xf32, #tpu.memory_space<any>>) target_semaphore(%53 : memref<!tpu.dma_semaphore, #tpu.memory_space<semaphore_mem>>)
    %c3_i32_63 = arith.constant 3 : i32
    %c9_i32 = arith.constant 9 : i32
    %c3_i32_64 = arith.constant 3 : i32
    %c0_i32_65 = arith.constant 0 : i32
    %c0_i32_66 = arith.constant 0 : i32
    %c0_i32_67 = arith.constant 0 : i32
    %54 = tpu.memref_slice %arg0[%c3_i32_63, %c0_i32_66, %c0_i32_67] : memref<4x16x128xf32, #tpu.memory_space<vmem>> -> memref<1x16x128xf32, #tpu.memory_space<vmem>>
    %55 = tpu.memref_squeeze %54 : memref<1x16x128xf32, #tpu.memory_space<vmem>> -> memref<16x128xf32, #tpu.memory_space<vmem>>
    %c1_i32_68 = arith.constant 1 : i32
    %c0_i32_69 = arith.constant 0 : i32
    %56 = tpu.memref_slice %arg2[%c9_i32, %c1_i32_68, %c0_i32_69] : memref<12x77x128xf32, #tpu.memory_space<any>> -> memref<1x16x128xf32, #tpu.memory_space<any>>
    %57 = tpu.memref_squeeze %56 : memref<1x16x128xf32, #tpu.memory_space<any>> -> memref<16x128xf32, #tpu.memory_space<any>>
    %58 = tpu.memref_slice %arg3[%c3_i32_64, %c0_i32_65] : memref<4x3x!tpu.dma_semaphore, #tpu.memory_space<semaphore_mem>> -> memref<1x1x!tpu.dma_semaphore, #tpu.memory_space<semaphore_mem>>
    %59 = tpu.memref_squeeze %58 : memref<1x1x!tpu.dma_semaphore, #tpu.memory_space<semaphore_mem>> -> memref<!tpu.dma_semaphore, #tpu.memory_space<semaphore_mem>>
    tpu.enqueue_dma source(%55 : memref<16x128xf32, #tpu.memory_space<vmem>>) target(%57 : memref<16x128xf32, #tpu.memory_space<any>>) target_semaphore(%59 : memref<!tpu.dma_semaphore, #tpu.memory_space<semaphore_mem>>)
    %c3_i32_70 = arith.constant 3 : i32
    %c10_i32 = arith.constant 10 : i32
    %c3_i32_71 = arith.constant 3 : i32
    %c1_i32_72 = arith.constant 1 : i32
    %c0_i32_73 = arith.constant 0 : i32
    %c0_i32_74 = arith.constant 0 : i32
    %60 = tpu.memref_slice %arg0[%c3_i32_70, %c0_i32_73, %c0_i32_74] : memref<4x16x128xf32, #tpu.memory_space<vmem>> -> memref<1x16x128xf32, #tpu.memory_space<vmem>>
    %61 = tpu.memref_squeeze %60 : memref<1x16x128xf32, #tpu.memory_space<vmem>> -> memref<16x128xf32, #tpu.memory_space<vmem>>
    %c1_i32_75 = arith.constant 1 : i32
    %c0_i32_76 = arith.constant 0 : i32
    %62 = tpu.memref_slice %arg2[%c10_i32, %c1_i32_75, %c0_i32_76] : memref<12x77x128xf32, #tpu.memory_space<any>> -> memref<1x16x128xf32, #tpu.memory_space<any>>
    %63 = tpu.memref_squeeze %62 : memref<1x16x128xf32, #tpu.memory_space<any>> -> memref<16x128xf32, #tpu.memory_space<any>>
    %64 = tpu.memref_slice %arg3[%c3_i32_71, %c1_i32_72] : memref<4x3x!tpu.dma_semaphore, #tpu.memory_space<semaphore_mem>> -> memref<1x1x!tpu.dma_semaphore, #tpu.memory_space<semaphore_mem>>
    %65 = tpu.memref_squeeze %64 : memref<1x1x!tpu.dma_semaphore, #tpu.memory_space<semaphore_mem>> -> memref<!tpu.dma_semaphore, #tpu.memory_space<semaphore_mem>>
    tpu.enqueue_dma source(%61 : memref<16x128xf32, #tpu.memory_space<vmem>>) target(%63 : memref<16x128xf32, #tpu.memory_space<any>>) target_semaphore(%65 : memref<!tpu.dma_semaphore, #tpu.memory_space<semaphore_mem>>)
    %c3_i32_77 = arith.constant 3 : i32
    %c11_i32 = arith.constant 11 : i32
    %c3_i32_78 = arith.constant 3 : i32
    %c2_i32_79 = arith.constant 2 : i32
    %c0_i32_80 = arith.constant 0 : i32
    %c0_i32_81 = arith.constant 0 : i32
    %66 = tpu.memref_slice %arg0[%c3_i32_77, %c0_i32_80, %c0_i32_81] : memref<4x16x128xf32, #tpu.memory_space<vmem>> -> memref<1x16x128xf32, #tpu.memory_space<vmem>>
    %67 = tpu.memref_squeeze %66 : memref<1x16x128xf32, #tpu.memory_space<vmem>> -> memref<16x128xf32, #tpu.memory_space<vmem>>
    %c1_i32_82 = arith.constant 1 : i32
    %c0_i32_83 = arith.constant 0 : i32
    %68 = tpu.memref_slice %arg2[%c11_i32, %c1_i32_82, %c0_i32_83] : memref<12x77x128xf32, #tpu.memory_space<any>> -> memref<1x16x128xf32, #tpu.memory_space<any>>
    %69 = tpu.memref_squeeze %68 : memref<1x16x128xf32, #tpu.memory_space<any>> -> memref<16x128xf32, #tpu.memory_space<any>>
    %70 = tpu.memref_slice %arg3[%c3_i32_78, %c2_i32_79] : memref<4x3x!tpu.dma_semaphore, #tpu.memory_space<semaphore_mem>> -> memref<1x1x!tpu.dma_semaphore, #tpu.memory_space<semaphore_mem>>
    %71 = tpu.memref_squeeze %70 : memref<1x1x!tpu.dma_semaphore, #tpu.memory_space<semaphore_mem>> -> memref<!tpu.dma_semaphore, #tpu.memory_space<semaphore_mem>>
    tpu.enqueue_dma source(%67 : memref<16x128xf32, #tpu.memory_space<vmem>>) target(%69 : memref<16x128xf32, #tpu.memory_space<any>>) target_semaphore(%71 : memref<!tpu.dma_semaphore, #tpu.memory_space<semaphore_mem>>)
    %c0_i32_84 = arith.constant 0 : i32
    %c0_i32_85 = arith.constant 0 : i32
    %c0_i32_86 = arith.constant 0 : i32
    %c0_i32_87 = arith.constant 0 : i32
    %c0_i32_88 = arith.constant 0 : i32
    %c0_i32_89 = arith.constant 0 : i32
    %72 = tpu.memref_slice %arg0[%c0_i32_84, %c0_i32_88, %c0_i32_89] : memref<4x16x128xf32, #tpu.memory_space<vmem>> -> memref<1x16x128xf32, #tpu.memory_space<vmem>>
    %73 = tpu.memref_squeeze %72 : memref<1x16x128xf32, #tpu.memory_space<vmem>> -> memref<16x128xf32, #tpu.memory_space<vmem>>
    %c1_i32_90 = arith.constant 1 : i32
    %c0_i32_91 = arith.constant 0 : i32
    %74 = tpu.memref_slice %arg2[%c0_i32_85, %c1_i32_90, %c0_i32_91] : memref<12x77x128xf32, #tpu.memory_space<any>> -> memref<1x16x128xf32, #tpu.memory_space<any>>
    %75 = tpu.memref_squeeze %74 : memref<1x16x128xf32, #tpu.memory_space<any>> -> memref<16x128xf32, #tpu.memory_space<any>>
    %76 = tpu.memref_slice %arg3[%c0_i32_86, %c0_i32_87] : memref<4x3x!tpu.dma_semaphore, #tpu.memory_space<semaphore_mem>> -> memref<1x1x!tpu.dma_semaphore, #tpu.memory_space<semaphore_mem>>
    %77 = tpu.memref_squeeze %76 : memref<1x1x!tpu.dma_semaphore, #tpu.memory_space<semaphore_mem>> -> memref<!tpu.dma_semaphore, #tpu.memory_space<semaphore_mem>>
    tpu.wait_dma2 semaphore(%77 : memref<!tpu.dma_semaphore, #tpu.memory_space<semaphore_mem>>) src(%73 : memref<16x128xf32, #tpu.memory_space<vmem>>) dst(%75 : memref<16x128xf32, #tpu.memory_space<any>>)
    %c0_i32_92 = arith.constant 0 : i32
    %c1_i32_93 = arith.constant 1 : i32
    %c0_i32_94 = arith.constant 0 : i32
    %c1_i32_95 = arith.constant 1 : i32
    %c0_i32_96 = arith.constant 0 : i32
    %c0_i32_97 = arith.constant 0 : i32
    %78 = tpu.memref_slice %arg0[%c0_i32_92, %c0_i32_96, %c0_i32_97] : memref<4x16x128xf32, #tpu.memory_space<vmem>> -> memref<1x16x128xf32, #tpu.memory_space<vmem>>
    %79 = tpu.memref_squeeze %78 : memref<1x16x128xf32, #tpu.memory_space<vmem>> -> memref<16x128xf32, #tpu.memory_space<vmem>>
    %c1_i32_98 = arith.constant 1 : i32
    %c0_i32_99 = arith.constant 0 : i32
    %80 = tpu.memref_slice %arg2[%c1_i32_93, %c1_i32_98, %c0_i32_99] : memref<12x77x128xf32, #tpu.memory_space<any>> -> memref<1x16x128xf32, #tpu.memory_space<any>>
    %81 = tpu.memref_squeeze %80 : memref<1x16x128xf32, #tpu.memory_space<any>> -> memref<16x128xf32, #tpu.memory_space<any>>
    %82 = tpu.memref_slice %arg3[%c0_i32_94, %c1_i32_95] : memref<4x3x!tpu.dma_semaphore, #tpu.memory_space<semaphore_mem>> -> memref<1x1x!tpu.dma_semaphore, #tpu.memory_space<semaphore_mem>>
    %83 = tpu.memref_squeeze %82 : memref<1x1x!tpu.dma_semaphore, #tpu.memory_space<semaphore_mem>> -> memref<!tpu.dma_semaphore, #tpu.memory_space<semaphore_mem>>
    tpu.wait_dma2 semaphore(%83 : memref<!tpu.dma_semaphore, #tpu.memory_space<semaphore_mem>>) src(%79 : memref<16x128xf32, #tpu.memory_space<vmem>>) dst(%81 : memref<16x128xf32, #tpu.memory_space<any>>)
    %c0_i32_100 = arith.constant 0 : i32
    %c2_i32_101 = arith.constant 2 : i32
    %c0_i32_102 = arith.constant 0 : i32
    %c2_i32_103 = arith.constant 2 : i32
    %c0_i32_104 = arith.constant 0 : i32
    %c0_i32_105 = arith.constant 0 : i32
    %84 = tpu.memref_slice %arg0[%c0_i32_100, %c0_i32_104, %c0_i32_105] : memref<4x16x128xf32, #tpu.memory_space<vmem>> -> memref<1x16x128xf32, #tpu.memory_space<vmem>>
    %85 = tpu.memref_squeeze %84 : memref<1x16x128xf32, #tpu.memory_space<vmem>> -> memref<16x128xf32, #tpu.memory_space<vmem>>
    %c1_i32_106 = arith.constant 1 : i32
    %c0_i32_107 = arith.constant 0 : i32
    %86 = tpu.memref_slice %arg2[%c2_i32_101, %c1_i32_106, %c0_i32_107] : memref<12x77x128xf32, #tpu.memory_space<any>> -> memref<1x16x128xf32, #tpu.memory_space<any>>
    %87 = tpu.memref_squeeze %86 : memref<1x16x128xf32, #tpu.memory_space<any>> -> memref<16x128xf32, #tpu.memory_space<any>>
    %88 = tpu.memref_slice %arg3[%c0_i32_102, %c2_i32_103] : memref<4x3x!tpu.dma_semaphore, #tpu.memory_space<semaphore_mem>> -> memref<1x1x!tpu.dma_semaphore, #tpu.memory_space<semaphore_mem>>
    %89 = tpu.memref_squeeze %88 : memref<1x1x!tpu.dma_semaphore, #tpu.memory_space<semaphore_mem>> -> memref<!tpu.dma_semaphore, #tpu.memory_space<semaphore_mem>>
    tpu.wait_dma2 semaphore(%89 : memref<!tpu.dma_semaphore, #tpu.memory_space<semaphore_mem>>) src(%85 : memref<16x128xf32, #tpu.memory_space<vmem>>) dst(%87 : memref<16x128xf32, #tpu.memory_space<any>>)
    %c1_i32_108 = arith.constant 1 : i32
    %c3_i32_109 = arith.constant 3 : i32
    %c1_i32_110 = arith.constant 1 : i32
    %c0_i32_111 = arith.constant 0 : i32
    %c0_i32_112 = arith.constant 0 : i32
    %c0_i32_113 = arith.constant 0 : i32
    %90 = tpu.memref_slice %arg0[%c1_i32_108, %c0_i32_112, %c0_i32_113] : memref<4x16x128xf32, #tpu.memory_space<vmem>> -> memref<1x16x128xf32, #tpu.memory_space<vmem>>
    %91 = tpu.memref_squeeze %90 : memref<1x16x128xf32, #tpu.memory_space<vmem>> -> memref<16x128xf32, #tpu.memory_space<vmem>>
    %c1_i32_114 = arith.constant 1 : i32
    %c0_i32_115 = arith.constant 0 : i32
    %92 = tpu.memref_slice %arg2[%c3_i32_109, %c1_i32_114, %c0_i32_115] : memref<12x77x128xf32, #tpu.memory_space<any>> -> memref<1x16x128xf32, #tpu.memory_space<any>>
    %93 = tpu.memref_squeeze %92 : memref<1x16x128xf32, #tpu.memory_space<any>> -> memref<16x128xf32, #tpu.memory_space<any>>
    %94 = tpu.memref_slice %arg3[%c1_i32_110, %c0_i32_111] : memref<4x3x!tpu.dma_semaphore, #tpu.memory_space<semaphore_mem>> -> memref<1x1x!tpu.dma_semaphore, #tpu.memory_space<semaphore_mem>>
    %95 = tpu.memref_squeeze %94 : memref<1x1x!tpu.dma_semaphore, #tpu.memory_space<semaphore_mem>> -> memref<!tpu.dma_semaphore, #tpu.memory_space<semaphore_mem>>
    tpu.wait_dma2 semaphore(%95 : memref<!tpu.dma_semaphore, #tpu.memory_space<semaphore_mem>>) src(%91 : memref<16x128xf32, #tpu.memory_space<vmem>>) dst(%93 : memref<16x128xf32, #tpu.memory_space<any>>)
    %c1_i32_116 = arith.constant 1 : i32
    %c4_i32_117 = arith.constant 4 : i32
    %c1_i32_118 = arith.constant 1 : i32
    %c1_i32_119 = arith.constant 1 : i32
    %c0_i32_120 = arith.constant 0 : i32
    %c0_i32_121 = arith.constant 0 : i32
    %96 = tpu.memref_slice %arg0[%c1_i32_116, %c0_i32_120, %c0_i32_121] : memref<4x16x128xf32, #tpu.memory_space<vmem>> -> memref<1x16x128xf32, #tpu.memory_space<vmem>>
    %97 = tpu.memref_squeeze %96 : memref<1x16x128xf32, #tpu.memory_space<vmem>> -> memref<16x128xf32, #tpu.memory_space<vmem>>
    %c1_i32_122 = arith.constant 1 : i32
    %c0_i32_123 = arith.constant 0 : i32
    %98 = tpu.memref_slice %arg2[%c4_i32_117, %c1_i32_122, %c0_i32_123] : memref<12x77x128xf32, #tpu.memory_space<any>> -> memref<1x16x128xf32, #tpu.memory_space<any>>
    %99 = tpu.memref_squeeze %98 : memref<1x16x128xf32, #tpu.memory_space<any>> -> memref<16x128xf32, #tpu.memory_space<any>>
    %100 = tpu.memref_slice %arg3[%c1_i32_118, %c1_i32_119] : memref<4x3x!tpu.dma_semaphore, #tpu.memory_space<semaphore_mem>> -> memref<1x1x!tpu.dma_semaphore, #tpu.memory_space<semaphore_mem>>
    %101 = tpu.memref_squeeze %100 : memref<1x1x!tpu.dma_semaphore, #tpu.memory_space<semaphore_mem>> -> memref<!tpu.dma_semaphore, #tpu.memory_space<semaphore_mem>>
    tpu.wait_dma2 semaphore(%101 : memref<!tpu.dma_semaphore, #tpu.memory_space<semaphore_mem>>) src(%97 : memref<16x128xf32, #tpu.memory_space<vmem>>) dst(%99 : memref<16x128xf32, #tpu.memory_space<any>>)
    %c1_i32_124 = arith.constant 1 : i32
    %c5_i32_125 = arith.constant 5 : i32
    %c1_i32_126 = arith.constant 1 : i32
    %c2_i32_127 = arith.constant 2 : i32
    %c0_i32_128 = arith.constant 0 : i32
    %c0_i32_129 = arith.constant 0 : i32
    %102 = tpu.memref_slice %arg0[%c1_i32_124, %c0_i32_128, %c0_i32_129] : memref<4x16x128xf32, #tpu.memory_space<vmem>> -> memref<1x16x128xf32, #tpu.memory_space<vmem>>
    %103 = tpu.memref_squeeze %102 : memref<1x16x128xf32, #tpu.memory_space<vmem>> -> memref<16x128xf32, #tpu.memory_space<vmem>>
    %c1_i32_130 = arith.constant 1 : i32
    %c0_i32_131 = arith.constant 0 : i32
    %104 = tpu.memref_slice %arg2[%c5_i32_125, %c1_i32_130, %c0_i32_131] : memref<12x77x128xf32, #tpu.memory_space<any>> -> memref<1x16x128xf32, #tpu.memory_space<any>>
    %105 = tpu.memref_squeeze %104 : memref<1x16x128xf32, #tpu.memory_space<any>> -> memref<16x128xf32, #tpu.memory_space<any>>
    %106 = tpu.memref_slice %arg3[%c1_i32_126, %c2_i32_127] : memref<4x3x!tpu.dma_semaphore, #tpu.memory_space<semaphore_mem>> -> memref<1x1x!tpu.dma_semaphore, #tpu.memory_space<semaphore_mem>>
    %107 = tpu.memref_squeeze %106 : memref<1x1x!tpu.dma_semaphore, #tpu.memory_space<semaphore_mem>> -> memref<!tpu.dma_semaphore, #tpu.memory_space<semaphore_mem>>
    tpu.wait_dma2 semaphore(%107 : memref<!tpu.dma_semaphore, #tpu.memory_space<semaphore_mem>>) src(%103 : memref<16x128xf32, #tpu.memory_space<vmem>>) dst(%105 : memref<16x128xf32, #tpu.memory_space<any>>)
    %c2_i32_132 = arith.constant 2 : i32
    %c6_i32_133 = arith.constant 6 : i32
    %c2_i32_134 = arith.constant 2 : i32
    %c0_i32_135 = arith.constant 0 : i32
    %c0_i32_136 = arith.constant 0 : i32
    %c0_i32_137 = arith.constant 0 : i32
    %108 = tpu.memref_slice %arg0[%c2_i32_132, %c0_i32_136, %c0_i32_137] : memref<4x16x128xf32, #tpu.memory_space<vmem>> -> memref<1x16x128xf32, #tpu.memory_space<vmem>>
    %109 = tpu.memref_squeeze %108 : memref<1x16x128xf32, #tpu.memory_space<vmem>> -> memref<16x128xf32, #tpu.memory_space<vmem>>
    %c1_i32_138 = arith.constant 1 : i32
    %c0_i32_139 = arith.constant 0 : i32
    %110 = tpu.memref_slice %arg2[%c6_i32_133, %c1_i32_138, %c0_i32_139] : memref<12x77x128xf32, #tpu.memory_space<any>> -> memref<1x16x128xf32, #tpu.memory_space<any>>
    %111 = tpu.memref_squeeze %110 : memref<1x16x128xf32, #tpu.memory_space<any>> -> memref<16x128xf32, #tpu.memory_space<any>>
    %112 = tpu.memref_slice %arg3[%c2_i32_134, %c0_i32_135] : memref<4x3x!tpu.dma_semaphore, #tpu.memory_space<semaphore_mem>> -> memref<1x1x!tpu.dma_semaphore, #tpu.memory_space<semaphore_mem>>
    %113 = tpu.memref_squeeze %112 : memref<1x1x!tpu.dma_semaphore, #tpu.memory_space<semaphore_mem>> -> memref<!tpu.dma_semaphore, #tpu.memory_space<semaphore_mem>>
    tpu.wait_dma2 semaphore(%113 : memref<!tpu.dma_semaphore, #tpu.memory_space<semaphore_mem>>) src(%109 : memref<16x128xf32, #tpu.memory_space<vmem>>) dst(%111 : memref<16x128xf32, #tpu.memory_space<any>>)
    %c2_i32_140 = arith.constant 2 : i32
    %c7_i32_141 = arith.constant 7 : i32
    %c2_i32_142 = arith.constant 2 : i32
    %c1_i32_143 = arith.constant 1 : i32
    %c0_i32_144 = arith.constant 0 : i32
    %c0_i32_145 = arith.constant 0 : i32
    %114 = tpu.memref_slice %arg0[%c2_i32_140, %c0_i32_144, %c0_i32_145] : memref<4x16x128xf32, #tpu.memory_space<vmem>> -> memref<1x16x128xf32, #tpu.memory_space<vmem>>
    %115 = tpu.memref_squeeze %114 : memref<1x16x128xf32, #tpu.memory_space<vmem>> -> memref<16x128xf32, #tpu.memory_space<vmem>>
    %c1_i32_146 = arith.constant 1 : i32
    %c0_i32_147 = arith.constant 0 : i32
    %116 = tpu.memref_slice %arg2[%c7_i32_141, %c1_i32_146, %c0_i32_147] : memref<12x77x128xf32, #tpu.memory_space<any>> -> memref<1x16x128xf32, #tpu.memory_space<any>>
    %117 = tpu.memref_squeeze %116 : memref<1x16x128xf32, #tpu.memory_space<any>> -> memref<16x128xf32, #tpu.memory_space<any>>
    %118 = tpu.memref_slice %arg3[%c2_i32_142, %c1_i32_143] : memref<4x3x!tpu.dma_semaphore, #tpu.memory_space<semaphore_mem>> -> memref<1x1x!tpu.dma_semaphore, #tpu.memory_space<semaphore_mem>>
    %119 = tpu.memref_squeeze %118 : memref<1x1x!tpu.dma_semaphore, #tpu.memory_space<semaphore_mem>> -> memref<!tpu.dma_semaphore, #tpu.memory_space<semaphore_mem>>
    tpu.wait_dma2 semaphore(%119 : memref<!tpu.dma_semaphore, #tpu.memory_space<semaphore_mem>>) src(%115 : memref<16x128xf32, #tpu.memory_space<vmem>>) dst(%117 : memref<16x128xf32, #tpu.memory_space<any>>)
    %c2_i32_148 = arith.constant 2 : i32
    %c8_i32_149 = arith.constant 8 : i32
    %c2_i32_150 = arith.constant 2 : i32
    %c2_i32_151 = arith.constant 2 : i32
    %c0_i32_152 = arith.constant 0 : i32
    %c0_i32_153 = arith.constant 0 : i32
    %120 = tpu.memref_slice %arg0[%c2_i32_148, %c0_i32_152, %c0_i32_153] : memref<4x16x128xf32, #tpu.memory_space<vmem>> -> memref<1x16x128xf32, #tpu.memory_space<vmem>>
    %121 = tpu.memref_squeeze %120 : memref<1x16x128xf32, #tpu.memory_space<vmem>> -> memref<16x128xf32, #tpu.memory_space<vmem>>
    %c1_i32_154 = arith.constant 1 : i32
    %c0_i32_155 = arith.constant 0 : i32
    %122 = tpu.memref_slice %arg2[%c8_i32_149, %c1_i32_154, %c0_i32_155] : memref<12x77x128xf32, #tpu.memory_space<any>> -> memref<1x16x128xf32, #tpu.memory_space<any>>
    %123 = tpu.memref_squeeze %122 : memref<1x16x128xf32, #tpu.memory_space<any>> -> memref<16x128xf32, #tpu.memory_space<any>>
    %124 = tpu.memref_slice %arg3[%c2_i32_150, %c2_i32_151] : memref<4x3x!tpu.dma_semaphore, #tpu.memory_space<semaphore_mem>> -> memref<1x1x!tpu.dma_semaphore, #tpu.memory_space<semaphore_mem>>
    %125 = tpu.memref_squeeze %124 : memref<1x1x!tpu.dma_semaphore, #tpu.memory_space<semaphore_mem>> -> memref<!tpu.dma_semaphore, #tpu.memory_space<semaphore_mem>>
    tpu.wait_dma2 semaphore(%125 : memref<!tpu.dma_semaphore, #tpu.memory_space<semaphore_mem>>) src(%121 : memref<16x128xf32, #tpu.memory_space<vmem>>) dst(%123 : memref<16x128xf32, #tpu.memory_space<any>>)
    %c3_i32_156 = arith.constant 3 : i32
    %c9_i32_157 = arith.constant 9 : i32
    %c3_i32_158 = arith.constant 3 : i32
    %c0_i32_159 = arith.constant 0 : i32
    %c0_i32_160 = arith.constant 0 : i32
    %c0_i32_161 = arith.constant 0 : i32
    %126 = tpu.memref_slice %arg0[%c3_i32_156, %c0_i32_160, %c0_i32_161] : memref<4x16x128xf32, #tpu.memory_space<vmem>> -> memref<1x16x128xf32, #tpu.memory_space<vmem>>
    %127 = tpu.memref_squeeze %126 : memref<1x16x128xf32, #tpu.memory_space<vmem>> -> memref<16x128xf32, #tpu.memory_space<vmem>>
    %c1_i32_162 = arith.constant 1 : i32
    %c0_i32_163 = arith.constant 0 : i32
    %128 = tpu.memref_slice %arg2[%c9_i32_157, %c1_i32_162, %c0_i32_163] : memref<12x77x128xf32, #tpu.memory_space<any>> -> memref<1x16x128xf32, #tpu.memory_space<any>>
    %129 = tpu.memref_squeeze %128 : memref<1x16x128xf32, #tpu.memory_space<any>> -> memref<16x128xf32, #tpu.memory_space<any>>
    %130 = tpu.memref_slice %arg3[%c3_i32_158, %c0_i32_159] : memref<4x3x!tpu.dma_semaphore, #tpu.memory_space<semaphore_mem>> -> memref<1x1x!tpu.dma_semaphore, #tpu.memory_space<semaphore_mem>>
    %131 = tpu.memref_squeeze %130 : memref<1x1x!tpu.dma_semaphore, #tpu.memory_space<semaphore_mem>> -> memref<!tpu.dma_semaphore, #tpu.memory_space<semaphore_mem>>
    tpu.wait_dma2 semaphore(%131 : memref<!tpu.dma_semaphore, #tpu.memory_space<semaphore_mem>>) src(%127 : memref<16x128xf32, #tpu.memory_space<vmem>>) dst(%129 : memref<16x128xf32, #tpu.memory_space<any>>)
    %c3_i32_164 = arith.constant 3 : i32
    %c10_i32_165 = arith.constant 10 : i32
    %c3_i32_166 = arith.constant 3 : i32
    %c1_i32_167 = arith.constant 1 : i32
    %c0_i32_168 = arith.constant 0 : i32
    %c0_i32_169 = arith.constant 0 : i32
    %132 = tpu.memref_slice %arg0[%c3_i32_164, %c0_i32_168, %c0_i32_169] : memref<4x16x128xf32, #tpu.memory_space<vmem>> -> memref<1x16x128xf32, #tpu.memory_space<vmem>>
    %133 = tpu.memref_squeeze %132 : memref<1x16x128xf32, #tpu.memory_space<vmem>> -> memref<16x128xf32, #tpu.memory_space<vmem>>
    %c1_i32_170 = arith.constant 1 : i32
    %c0_i32_171 = arith.constant 0 : i32
    %134 = tpu.memref_slice %arg2[%c10_i32_165, %c1_i32_170, %c0_i32_171] : memref<12x77x128xf32, #tpu.memory_space<any>> -> memref<1x16x128xf32, #tpu.memory_space<any>>
    %135 = tpu.memref_squeeze %134 : memref<1x16x128xf32, #tpu.memory_space<any>> -> memref<16x128xf32, #tpu.memory_space<any>>
    %136 = tpu.memref_slice %arg3[%c3_i32_166, %c1_i32_167] : memref<4x3x!tpu.dma_semaphore, #tpu.memory_space<semaphore_mem>> -> memref<1x1x!tpu.dma_semaphore, #tpu.memory_space<semaphore_mem>>
    %137 = tpu.memref_squeeze %136 : memref<1x1x!tpu.dma_semaphore, #tpu.memory_space<semaphore_mem>> -> memref<!tpu.dma_semaphore, #tpu.memory_space<semaphore_mem>>
    tpu.wait_dma2 semaphore(%137 : memref<!tpu.dma_semaphore, #tpu.memory_space<semaphore_mem>>) src(%133 : memref<16x128xf32, #tpu.memory_space<vmem>>) dst(%135 : memref<16x128xf32, #tpu.memory_space<any>>)
    %c3_i32_172 = arith.constant 3 : i32
    %c11_i32_173 = arith.constant 11 : i32
    %c3_i32_174 = arith.constant 3 : i32
    %c2_i32_175 = arith.constant 2 : i32
    %c0_i32_176 = arith.constant 0 : i32
    %c0_i32_177 = arith.constant 0 : i32
    %138 = tpu.memref_slice %arg0[%c3_i32_172, %c0_i32_176, %c0_i32_177] : memref<4x16x128xf32, #tpu.memory_space<vmem>> -> memref<1x16x128xf32, #tpu.memory_space<vmem>>
    %139 = tpu.memref_squeeze %138 : memref<1x16x128xf32, #tpu.memory_space<vmem>> -> memref<16x128xf32, #tpu.memory_space<vmem>>
    %c1_i32_178 = arith.constant 1 : i32
    %c0_i32_179 = arith.constant 0 : i32
    %140 = tpu.memref_slice %arg2[%c11_i32_173, %c1_i32_178, %c0_i32_179] : memref<12x77x128xf32, #tpu.memory_space<any>> -> memref<1x16x128xf32, #tpu.memory_space<any>>
    %141 = tpu.memref_squeeze %140 : memref<1x16x128xf32, #tpu.memory_space<any>> -> memref<16x128xf32, #tpu.memory_space<any>>
    %142 = tpu.memref_slice %arg3[%c3_i32_174, %c2_i32_175] : memref<4x3x!tpu.dma_semaphore, #tpu.memory_space<semaphore_mem>> -> memref<1x1x!tpu.dma_semaphore, #tpu.memory_space<semaphore_mem>>
    %143 = tpu.memref_squeeze %142 : memref<1x1x!tpu.dma_semaphore, #tpu.memory_space<semaphore_mem>> -> memref<!tpu.dma_semaphore, #tpu.memory_space<semaphore_mem>>
    tpu.wait_dma2 semaphore(%143 : memref<!tpu.dma_semaphore, #tpu.memory_space<semaphore_mem>>) src(%139 : memref<16x128xf32, #tpu.memory_space<vmem>>) dst(%141 : memref<16x128xf32, #tpu.memory_space<any>>)
    return
  }
}

</mosaic_0001>

<bundles_post_ra>
// kernel: _forward_impl.1
= control target key start
LH: loop header
LB: loop body
LE: loop exit
PB: predicated region body
PF: predicated region fallthrough
CT: control target
= control target key end

     0   :  { %7 = vsyncpa [#allocation4], 0  ;;  %s630_s9 = smov [#allocation3]   ;;  %s720_s0 = inlined_call_operand.hbm [shape: f32[4,16,128], index: 0, kind: input, shape index: {}]   ;;  %s721_s1 = inlined_call_operand.hbm [shape: f32[12,77,128], index: 1, kind: input, shape index: {}, may-alias: {1,2}]   ;;  %s722_s2 = inlined_call_operand.hbm [shape: f32[12,77,128], index: 2, kind: output, shape index: {}, may-alias: {1,2}]  }
   0x1   :  { %s13_s10 = sshll.u32 %s630_s9, 4  ;;  %s651_s10 = int_to_ptr.vmem [resolvable:$true] %s13_s10 }
   0x2   :  { %s654_s11 = scalar_lea.vmem %s651_s10, 1024  ;;  %p321_p1 = scmp.lt.s32.totalorder %s651_s10, %s651_s10 }
   0x3   :  { %p317_p0 = scmp.ne.s32.totalorder %s651_s10, %s654_s11  ;;  %p322_p2 = scmp.lt.s32.totalorder %s654_s11, %s654_s11 }
   0x5   :  { %p323_p3 = por %p322_p2, %p321_p1 }
   0x7   :  { %p324_p4 = pnand %p323_p3, %p317_p0 }
   0x9   :  { %327 = shalt.err (!%p324_p4)
}
   0xa   :  { %s631_s1 = smov 128   ;;  %s632_s12 = smov 8  }
   0xb   :  { %19 = dma.hbm_to_vmem [thread:$0]  %s720_s0, 1024, %s651_s10, [#allocation4], %s631_s1, %s631_s1, %s632_s12  }
   0xc   :  { %604 = dma.done.wait [#allocation4], 1024  }
   0xd   :  { %605 = vsyncadd [#allocation4], 4294966272  ;;  %s23_s17 = scalar_lea.hbm %s722_s2, 16  ;;  %s35_s20 = scalar_lea.hbm %s722_s2, 1296 }
   0xe   :  { %s328_s21 = scalar_lea.vmem %s651_s10, 256 }
   0xf   :  { %p329_p5 = scmp.ne.s32.totalorder %s651_s10, %s328_s21  ;;  %p334_p6 = scmp.lt.s32.totalorder %s654_s11, %s328_s21 }
  0x11   :  { %p335_p7 = por %p334_p6, %p321_p1 }
  0x13   :  { %p336_p8 = pnand %p335_p7, %p329_p5 }
  0x15   :  { %339 = shalt.err (!%p336_p8)  }
  0x16   :  { %34 = dma.vmem_to_hbm [thread:$0]  %s651_s10, 256, %s23_s17, [#allocation2] }
  0x17   :  { %362 = shalt.err (!%p336_p8)  }
  0x18   :  { %47 = dma.vmem_to_hbm [thread:$0]  %s651_s10, 256, %s35_s20, [#allocation2 + $0x1] }
  0x19   :  { %s48_s23 = scalar_lea.hbm %s722_s2, 2576 }
  0x1a   :  { %385 = shalt.err (!%p336_p8)  }
  0x1b   :  { %60 = dma.vmem_to_hbm [thread:$0]  %s651_s10, 256, %s48_s23, [#allocation2 + $0x2] }
  0x1c   :  { %s62_s26 = scalar_lea.hbm %s722_s2, 3856  ;;  %s633_s27 = smov [#allocation3 + $0x10]  }
  0x1d   :  { %s71_s28 = sshll.u32 %s633_s27, 4  ;;  %s75_s3 = scalar_lea.hbm %s722_s2, 5136  ;;  %s72_s28 = int_to_ptr.vmem [resolvable:$true] %s71_s28 }
  0x1e   :  { %s88_s6 = scalar_lea.hbm %s722_s2, 6416  ;;  %s397_s7 = scalar_lea.vmem %s72_s28, 256 }
  0x1f   :  { %p398_p9 = scmp.ne.s32.totalorder %s72_s28, %s397_s7  ;;  %p402_p10 = scmp.lt.s32.totalorder %s72_s28, %s651_s10 }
  0x20   :  { %p403_p11 = scmp.lt.s32.totalorder %s654_s11, %s397_s7 }
  0x22   :  { %p404_p12 = por %p403_p11, %p402_p10 }
  0x24   :  { %p405_p13 = pnand %p404_p12, %p398_p9 }
  0x26   :  { %408 = shalt.err (!%p405_p13)  }
  0x27   :  { %74 = dma.vmem_to_hbm [thread:$0]  %s72_s28, 256, %s62_s26, [#allocation2 + $0x3] }
  0x28   :  { %431 = shalt.err (!%p405_p13)  }
  0x29   :  { %87 = dma.vmem_to_hbm [thread:$0]  %s72_s28, 256, %s75_s3, [#allocation2 + $0x4] }
  0x2a   :  { %454 = shalt.err (!%p405_p13)  }
  0x2b   :  { %100 = dma.vmem_to_hbm [thread:$0]  %s72_s28, 256, %s88_s6, [#allocation2 + $0x5] }
  0x2c   :  { %s102_s1 = scalar_lea.hbm %s722_s2, 7696  ;;  %s634_s12 = smov [#allocation3 + $0x20]  }
  0x2d   :  { %s111_s13 = sshll.u32 %s634_s12, 4  ;;  %s115_s16 = scalar_lea.hbm %s722_s2, 8976  ;;  %s112_s13 = int_to_ptr.vmem [resolvable:$true] %s111_s13 }
  0x2e   :  { %s128_s19 = scalar_lea.hbm %s722_s2, 10256  ;;  %s466_s20 = scalar_lea.vmem %s112_s13, 256 }
  0x2f   :  { %p467_p0 = scmp.ne.s32.totalorder %s112_s13, %s466_s20  ;;  %p471_p1 = scmp.lt.s32.totalorder %s112_s13, %s651_s10 }
  0x30   :  { %p472_p2 = scmp.lt.s32.totalorder %s654_s11, %s466_s20 }
  0x32   :  { %p473_p3 = por %p472_p2, %p471_p1 }
  0x34   :  { %p474_p4 = pnand %p473_p3, %p467_p0 }
  0x36   :  { %477 = shalt.err (!%p474_p4)  }
  0x37   :  { %114 = dma.vmem_to_hbm [thread:$0]  %s112_s13, 256, %s102_s1, [#allocation2 + $0x6] }
  0x38   :  { %500 = shalt.err (!%p474_p4)  }
  0x39   :  { %127 = dma.vmem_to_hbm [thread:$0]  %s112_s13, 256, %s115_s16, [#allocation2 + $0x7] }
  0x3a   :  { %523 = shalt.err (!%p474_p4)  }
  0x3b   :  { %140 = dma.vmem_to_hbm [thread:$0]  %s112_s13, 256, %s128_s19, [#allocation2 + $0x8] }
  0x3c   :  { %s142_s22 = scalar_lea.hbm %s722_s2, 11536  ;;  %s635_s23 = smov [#allocation3 + $0x30]  }
  0x3d   :  { %s151_s24 = sshll.u32 %s635_s23, 4  ;;  %s155_s27 = scalar_lea.hbm %s722_s2, 12816  ;;  %s152_s24 = int_to_ptr.vmem [resolvable:$true] %s151_s24 }
  0x3e   :  { %s168_s30 = scalar_lea.hbm %s722_s2, 14096  ;;  %s535_s3 = scalar_lea.vmem %s152_s24, 256 }
  0x3f   :  { %p536_p5 = scmp.ne.s32.totalorder %s152_s24, %s535_s3  ;;  %p540_p6 = scmp.lt.s32.totalorder %s152_s24, %s651_s10 }
  0x40   :  { %p541_p7 = scmp.lt.s32.totalorder %s654_s11, %s535_s3 }
  0x42   :  { %p542_p8 = por %p541_p7, %p540_p6 }
  0x44   :  { %p543_p9 = pnand %p542_p8, %p536_p5 }
  0x46   :  { %546 = shalt.err (!%p543_p9)  }
  0x47   :  { %154 = dma.vmem_to_hbm [thread:$0]  %s152_s24, 256, %s142_s22, [#allocation2 + $0x9] }
  0x48   :  { %569 = shalt.err (!%p543_p9)  }
  0x49   :  { %167 = dma.vmem_to_hbm [thread:$0]  %s152_s24, 256, %s155_s27, [#allocation2 + $0xa] }
  0x4a   :  { %592 = shalt.err (!%p543_p9)  }
  0x4b   :  { %180 = dma.vmem_to_hbm [thread:$0]  %s152_s24, 256, %s168_s30, [#allocation2 + $0xb] }
  0x4c   :  { %606 = dma.done.wait [#allocation2], 256 }
  0x4d   :  { %607 = vsyncadd [#allocation2], 4294967040 }
  0x4e   :  { %608 = dma.done.wait [#allocation2 + $0x1], 256 }
  0x4f   :  { %609 = vsyncadd [#allocation2 + $0x1], 4294967040 }
  0x50   :  { %610 = dma.done.wait [#allocation2 + $0x2], 256 }
  0x51   :  { %611 = vsyncadd [#allocation2 + $0x2], 4294967040 }
  0x52   :  { %612 = dma.done.wait [#allocation2 + $0x3], 256 }
  0x53   :  { %613 = vsyncadd [#allocation2 + $0x3], 4294967040 }
  0x54   :  { %614 = dma.done.wait [#allocation2 + $0x4], 256 }
  0x55   :  { %615 = vsyncadd [#allocation2 + $0x4], 4294967040 }
  0x56   :  { %616 = dma.done.wait [#allocation2 + $0x5], 256 }
  0x57   :  { %617 = vsyncadd [#allocation2 + $0x5], 4294967040 }
  0x58   :  { %618 = dma.done.wait [#allocation2 + $0x6], 256 }
  0x59   :  { %619 = vsyncadd [#allocation2 + $0x6], 4294967040 }
  0x5a   :  { %620 = dma.done.wait [#allocation2 + $0x7], 256 }
  0x5b   :  { %621 = vsyncadd [#allocation2 + $0x7], 4294967040 }
  0x5c   :  { %622 = dma.done.wait [#allocation2 + $0x8], 256 }
  0x5d   :  { %623 = vsyncadd [#allocation2 + $0x8], 4294967040 }
  0x5e   :  { %624 = dma.done.wait [#allocation2 + $0x9], 256 }
  0x5f   :  { %625 = vsyncadd [#allocation2 + $0x9], 4294967040 }
  0x60   :  { %626 = dma.done.wait [#allocation2 + $0xa], 256 }
  0x61   :  { %627 = vsyncadd [#allocation2 + $0xa], 4294967040 }
  0x62   :  { %628 = dma.done.wait [#allocation2 + $0xb], 256 }
  0x63   :  { %629 = vsyncadd [#allocation2 + $0xb], 4294967040 }
  0x64   :  { %206 = vsyncpa [#allocation4], 1 }
  0x65   :  { %207 = vsyncmov [#allocation2] }
  0x68   :  { %s208_s2 = vpop.sfrf %207 }
  0x69   :  { %p290_p10 = scmp.ne.s32.totalorder %s208_s2, 0 }
  0x6b   :  { %212 = shalt.err (%p290_p10)  }
  0x6c   :  { %214 = vsyncmov [#allocation2 + $0x1] }
  0x6f   :  { %s215_s10 = vpop.sfrf %214 }
  0x70   :  { %p291_p11 = scmp.ne.s32.totalorder %s215_s10, 0 }
  0x72   :  { %219 = shalt.err (%p291_p11)  }
  0x73   :  { %221 = vsyncmov [#allocation2 + $0x2] }
  0x76   :  { %s222_s11 = vpop.sfrf %221 }
  0x77   :  { %p292_p12 = scmp.ne.s32.totalorder %s222_s11, 0 }
  0x79   :  { %226 = shalt.err (%p292_p12)  }
  0x7a   :  { %228 = vsyncmov [#allocation2 + $0x3] }
  0x7d   :  { %s229_s4 = vpop.sfrf %228 }
  0x7e   :  { %p293_p13 = scmp.ne.s32.totalorder %s229_s4, 0 }
  0x80   :  { %233 = shalt.err (%p293_p13)  }
  0x81   :  { %235 = vsyncmov [#allocation2 + $0x4] }
  0x84   :  { %s236_s5 = vpop.sfrf %235 }
  0x85   :  { %p294_p0 = scmp.ne.s32.totalorder %s236_s5, 0 }
  0x87   :  { %240 = shalt.err (%p294_p0)  }
  0x88   :  { %242 = vsyncmov [#allocation2 + $0x5] }
  0x8b   :  { %s243_s6 = vpop.sfrf %242 }
  0x8c   :  { %p295_p1 = scmp.ne.s32.totalorder %s243_s6, 0 }
  0x8e   :  { %247 = shalt.err (%p295_p1)  }
  0x8f   :  { %249 = vsyncmov [#allocation2 + $0x6] }
  0x92   :  { %s250_s7 = vpop.sfrf %249 }
  0x93   :  { %p296_p2 = scmp.ne.s32.totalorder %s250_s7, 0 }
  0x95   :  { %254 = shalt.err (%p296_p2)  }
  0x96   :  { %256 = vsyncmov [#allocation2 + $0x7] }
  0x99   :  { %s257_s8 = vpop.sfrf %256 }
  0x9a   :  { %p297_p3 = scmp.ne.s32.totalorder %s257_s8, 0 }
  0x9c   :  { %261 = shalt.err (%p297_p3)  }
  0x9d   :  { %263 = vsyncmov [#allocation2 + $0x8] }
  0xa0   :  { %s264_s9 = vpop.sfrf %263 }
  0xa1   :  { %p298_p4 = scmp.ne.s32.totalorder %s264_s9, 0 }
  0xa3   :  { %268 = shalt.err (%p298_p4)  }
  0xa4   :  { %270 = vsyncmov [#allocation2 + $0x9] }
  0xa7   :  { %s271_s1 = vpop.sfrf %270 }
  0xa8   :  { %p299_p5 = scmp.ne.s32.totalorder %s271_s1, 0 }
  0xaa   :  { %275 = shalt.err (%p299_p5)  }
  0xab   :  { %277 = vsyncmov [#allocation2 + $0xa] }
  0xae   :  { %s278_s12 = vpop.sfrf %277 }
  0xaf   :  { %p300_p6 = scmp.ne.s32.totalorder %s278_s12, 0 }
  0xb1   :  { %282 = shalt.err (%p300_p6)  }
  0xb2   :  { %284 = vsyncmov [#allocation2 + $0xb] }
  0xb5   :  { %s285_s13 = vpop.sfrf %284 }
  0xb6   :  { %p301_p7 = scmp.ne.s32.totalorder %s285_s13, 0 }
  0xb8   :  { %289 = shalt.err (%p301_p7)  }

</bundles_post_ra>
